<compile_context>
chip_gen: v7x
topology: tpu7x:2x2x1
jax: 0.10.0
libtpu: 0.0.40
codegen_flags: <defaults>
</compile_context>

<pallas_src>
import jax
import jax.numpy as jnp
import numpy as np
from jax.experimental import pallas as pl
from jax.experimental.pallas import tpu as pltpu


# ---------------------------------------------------------------------------
# Glue (plain JAX, cheap): dense tridiag(+corner) operator and Krylov rows
# via power doubling.  Convention: M[i,i]=diag[i], M[i+1,i]=subd[i],
# M[i,i+1]=supd[i], M[0,n-1]+=corners[0], M[n-1,0]+=corners[1].
# ---------------------------------------------------------------------------
def dense_tridiag(subd, diag, supd, corners):
    n = diag.shape[0]
    M = jnp.diag(diag) + jnp.diag(subd, -1) + jnp.diag(supd, 1)
    M = M.at[0, n - 1].add(corners[0])
    M = M.at[n - 1, 0].add(corners[1])
    return M


def krylov_rows(A, V):
    """Rows R[i, j, :] = A^j V[i]  for j = 0..n-1  (i.e. K(A, V[i])^T).

    Power-doubling: R_{2m} = [R_m ; R_m @ (A^m)^T], A^{2m} = A^m A^m.
    log2(n) dense matmuls instead of n sequential matvecs.
    """
    r, n = V.shape
    R = V[:, None, :]          # (r, 1, n) : A^0 v
    M = A                      # A^m with m = 1
    m = 1
    while m < n:
        # new[i, j, :] = A^m (A^j V[i])
        new = jnp.einsum("rjk,pk->rjp", R, M)
        R = jnp.concatenate([R, new], axis=1)
        m *= 2
        if m < n:
            M = M @ M
    return R[:, :n, :]


def _round_up(a, m):
    return (a + m - 1) // m * m


# ---------------------------------------------------------------------------
# Pallas kernel:
#   grid = (batch tiles [parallel], contraction tiles over r*n [arbitrary])
#   o_ref is resident across the contraction axis; initialized with bias at
#   k==0 and accumulated into directly (no scratch accumulator).
#   tmp[b, k] = sum_p x[b, p] * CB[k, p]          ( == x @ K_B, flattened rank )
#   out[b, q] += sum_k tmp[b, k] * CA[k, q]       ( == (x @ K_B) @ K_A^T, summed over rank )
# ---------------------------------------------------------------------------
def _ldr_kernel(x_ref, cb_ref, ca_ref, b_ref, o_ref):
    ki = pl.program_id(1)

    @pl.when(ki == 0)
    def _():
        o_ref[...] = jnp.broadcast_to(b_ref[...], o_ref.shape).astype(o_ref.dtype)

    x = x_ref[...]          # (TB, n_pad)
    cb = cb_ref[...]        # (TK, n_pad)   rows of K_B^T (flattened rank x power)
    ca = ca_ref[...]        # (TK, n_pad)   rows of K_A^T (flattened rank x power)

    tmp = jax.lax.dot_general(
        x, cb,
        dimension_numbers=(((1,), (1,)), ((), ())),
        preferred_element_type=jnp.float32,
    )                                                         # (TB, TK), f32
    contrib = jnp.dot(tmp.astype(ca.dtype), ca,
                      preferred_element_type=jnp.float32)     # (TB, n_pad), f32
    o_ref[...] += contrib.astype(o_ref.dtype)


def ldr_tridiagonal_forward(x, params, corners_A=(0.0, 0.0), corners_B=(0.0, 0.0),
                            compute_dtype=jnp.float32):
    """x: (batch, layer_size) f32 -> (batch, layer_size) f32."""
    G, H, bias = params["G"], params["H"], params["b"]
    r, n = G.shape
    batch = x.shape[0]

    A = dense_tridiag(params["subd_A"], params["diag_A"], params["supd_A"], corners_A)
    B = dense_tridiag(params["subd_B"], params["diag_B"], params["supd_B"], corners_B)
    CA = krylov_rows(A, G)   # (r, n, n) : K(A, g_i)^T as rows — no transpose needed
    CB = krylov_rows(B, H)   # (r, n, n) : K(B, h_i)^T as rows

    # --- padding / tiling choices -----------------------------------------
    n_pad = _round_up(n, 128)                       # lane-dense last dim
    TB = min(_round_up(batch, 8), 512)              # batch tile (parallel axis)
    batch_pad = _round_up(batch, TB)
    K_total = r * n                                 # fused rank*power contraction
    TK = min(_round_up(K_total, 128), 512)          # contraction tile (arbitrary axis)
    K_pad = _round_up(K_total, TK)

    # Flatten rank x power into one contraction axis; zero-pad lanes and
    # contraction rows (zeros contribute nothing to the accumulation).
    CA_flat = jnp.pad(CA.reshape(K_total, n), ((0, K_pad - K_total), (0, n_pad - n)))
    CB_flat = jnp.pad(CB.reshape(K_total, n), ((0, K_pad - K_total), (0, n_pad - n)))
    x_pad = jnp.pad(x.astype(jnp.float32), ((0, batch_pad - batch), (0, n_pad - n)))
    b_pad = jnp.pad(bias.astype(jnp.float32), (0, n_pad - n)).reshape(1, n_pad)

    x_pad = x_pad.astype(compute_dtype)
    CA_flat = CA_flat.astype(compute_dtype)
    CB_flat = CB_flat.astype(compute_dtype)

    grid = (batch_pad // TB, K_pad // TK)

    out = pl.pallas_call(
        _ldr_kernel,
        out_shape=jax.ShapeDtypeStruct((batch_pad, n_pad), jnp.float32),
        grid_spec=pltpu.PrefetchScalarGridSpec(
            num_scalar_prefetch=0,
            grid=grid,
            in_specs=[
                pl.BlockSpec((TB, n_pad), lambda bi, ki: (bi, 0)),   # x (resident per batch tile)
                pl.BlockSpec((TK, n_pad), lambda bi, ki: (ki, 0)),   # K_B^T rows, contraction tile
                pl.BlockSpec((TK, n_pad), lambda bi, ki: (ki, 0)),   # K_A^T rows, contraction tile
                pl.BlockSpec((1, n_pad), lambda bi, ki: (0, 0)),     # bias
            ],
            out_specs=pl.BlockSpec((TB, n_pad), lambda bi, ki: (bi, 0)),
        ),
        compiler_params=pltpu.CompilerParams(
            dimension_semantics=("parallel", "arbitrary"),
            vmem_limit_bytes=64 * 1024 * 1024,
        ),
    )(x_pad, CB_flat, CA_flat, b_pad)

    return out[:batch, :n]


# ---------------------------------------------------------------------------
# Pure-JAX reference (dense, sequential Krylov) for verification.
# ---------------------------------------------------------------------------
def _dense_krylov(M, v):
    cols = [v]
    for _ in range(v.shape[0] - 1):
        cols.append(M @ cols[-1])
    return jnp.stack(cols, axis=-1)


def reference_forward(x, params, corners_A=(0.0, 0.0), corners_B=(0.0, 0.0)):
    A = dense_tridiag(params["subd_A"], params["diag_A"], params["supd_A"], corners_A)
    B = dense_tridiag(params["subd_B"], params["diag_B"], params["supd_B"], corners_B)
    G, H = params["G"], params["H"]
    r, n = G.shape
    W = jnp.zeros((n, n), jnp.float32)
    for i in range(r):
        W = W + _dense_krylov(A, G[i]) @ _dense_krylov(B, H[i]).T
    return params["b"][None, :] + x @ W.T


if __name__ == "__main__":
    # Deliberately non-aligned small shapes to exercise the padding path.
    layer_size = 24   # n
    batch = 6
    r = 3             # displacement rank (module ctor kwarg; default 1)

    key = jax.random.PRNGKey(0)
    kg, kh, kx = jax.random.split(key, 3)
    std = (1.0 / (r * layer_size)) ** 0.5

    # Deterministic parameter init, mirroring LDRTridiagonal.__init__
    # (tie_operators=False, corner=False, bias=True).
    params = dict(
        G=std * jax.random.normal(kg, (r, layer_size), jnp.float32),
        H=std * jax.random.normal(kh, (r, layer_size), jnp.float32),
        subd_A=jnp.ones((layer_size - 1,), jnp.float32),
        diag_A=jnp.zeros((layer_size,), jnp.float32),
        supd_A=jnp.zeros((layer_size - 1,), jnp.float32),
        subd_B=jnp.ones((layer_size - 1,), jnp.float32),
        diag_B=jnp.zeros((layer_size,), jnp.float32),
        supd_B=jnp.zeros((layer_size - 1,), jnp.float32),
        b=jnp.zeros((layer_size,), jnp.float32),
    )
    x = jax.random.normal(kx, (batch, layer_size), jnp.float32)

    ref = reference_forward(x, params)

    # f32 path (default): tight check against the dense reference.
    out = jax.block_until_ready(ldr_tridiagonal_forward(x, params))
    np.testing.assert_allclose(np.asarray(out), np.asarray(ref), rtol=3e-4, atol=1e-4)

    # bf16 operand path (f32 accumulation): loose check.
    out_bf16 = jax.block_until_ready(
        ldr_tridiagonal_forward(x, params, compute_dtype=jnp.bfloat16))
    np.testing.assert_allclose(np.asarray(out_bf16), np.asarray(ref), rtol=5e-2, atol=5e-2)

    print("KERNEL_OK")
</pallas_src>

<mosaic_0001>
module attributes {stable_mosaic.version = 11 : i64} {
  func.func @_ldr_kernel(%arg0: i32, %arg1: i32, %arg2: memref<8x128xf32, #tpu.memory_space<vmem>>, %arg3: memref<128x128xf32, #tpu.memory_space<vmem>>, %arg4: memref<128x128xf32, #tpu.memory_space<vmem>>, %arg5: memref<1x128xf32, #tpu.memory_space<vmem>>, %arg6: memref<8x128xf32, #tpu.memory_space<vmem>>) attributes {dimension_semantics = [#tpu.dimension_semantics<parallel>, #tpu.dimension_semantics<arbitrary>], iteration_bounds = array<i64: 1, 1>, scalar_prefetch = 0 : i64, scratch_operands = 0 : i64, tpu.core_type = #tpu.core_type<tc>, window_params = [{transform_indices = @transform_0, window_bounds = array<i64: 8, 128>}, {transform_indices = @transform_1, window_bounds = array<i64: 128, 128>}, {transform_indices = @transform_2, window_bounds = array<i64: 128, 128>}, {pipeline_mode = #tpu.pipeline_mode<synchronous>, transform_indices = @transform_3, window_bounds = array<i64: 1, 128>}, {transform_indices = @transform_4, window_bounds = array<i64: 8, 128>}]} {
    %c0_i32 = arith.constant 0 : i32
    %0 = arith.cmpi eq, %arg1, %c0_i32 : i32
    %1 = arith.extui %0 : i1 to i32
    %c0_i32_0 = arith.constant 0 : i32
    %2 = arith.cmpi ne, %1, %c0_i32_0 : i32
    scf.if %2 {
      %c0_11 = arith.constant 0 : index
      %c0_12 = arith.constant 0 : index
      %11 = vector.load %arg5[%c0_11, %c0_12] : memref<1x128xf32, #tpu.memory_space<vmem>>, vector<1x128xf32>
      %12 = vector.shape_cast %11 : vector<1x128xf32> to vector<1x128xf32>
      %13 = vector.broadcast %12 : vector<1x128xf32> to vector<8x128xf32>
      %c0_13 = arith.constant 0 : index
      %c0_14 = arith.constant 0 : index
      %14 = vector.load %arg6[%c0_13, %c0_14] : memref<8x128xf32, #tpu.memory_space<vmem>>, vector<8x128xf32>
      tpu.vector_store %arg6[%c0_13, %c0_14], %13 {strides = array<i32>} : memref<8x128xf32, #tpu.memory_space<vmem>>, vector<8x128xf32>,
    } else {
    }
    %c0 = arith.constant 0 : index
    %c0_1 = arith.constant 0 : index
    %3 = vector.load %arg2[%c0, %c0_1] : memref<8x128xf32, #tpu.memory_space<vmem>>, vector<8x128xf32>
    %c0_2 = arith.constant 0 : index
    %c0_3 = arith.constant 0 : index
    %4 = vector.load %arg3[%c0_2, %c0_3] : memref<128x128xf32, #tpu.memory_space<vmem>>, vector<128x128xf32>
    %c0_4 = arith.constant 0 : index
    %c0_5 = arith.constant 0 : index
    %5 = vector.load %arg4[%c0_4, %c0_5] : memref<128x128xf32, #tpu.memory_space<vmem>>, vector<128x128xf32>
    %cst = arith.constant dense<0.000000e+00> : vector<8x128xf32>
    %6 = tpu.matmul %3, %4, %cst {dimension_numbers = #tpu.dot_dimension_numbers<[1], [1], [0], [0], [0, 0, 1, 0], [], []>} : vector<8x128xf32>, vector<128x128xf32>, vector<8x128xf32> -> vector<8x128xf32>
    %cst_6 = arith.constant dense<0.000000e+00> : vector<8x128xf32>
    %7 = tpu.matmul %6, %5, %cst_6 {dimension_numbers = #tpu.dot_dimension_numbers<[1], [0], [0], [1], [0, 0, 1, 1], [], []>} : vector<8x128xf32>, vector<128x128xf32>, vector<8x128xf32> -> vector<8x128xf32>
    %c0_7 = arith.constant 0 : index
    %c0_8 = arith.constant 0 : index
    %8 = vector.load %arg6[%c0_7, %c0_8] : memref<8x128xf32, #tpu.memory_space<vmem>>, vector<8x128xf32>
    %9 = arith.addf %8, %7 : vector<8x128xf32>
    %c0_9 = arith.constant 0 : index
    %c0_10 = arith.constant 0 : index
    %10 = vector.load %arg6[%c0_9, %c0_10] : memref<8x128xf32, #tpu.memory_space<vmem>>, vector<8x128xf32>
    tpu.vector_store %arg6[%c0_9, %c0_10], %9 {strides = array<i32>} : memref<8x128xf32, #tpu.memory_space<vmem>>, vector<8x128xf32>,
    return
  }
  func.func @transform_0(%arg0: i32, %arg1: i32) -> (i32, i32) {
    %c0_i32 = arith.constant 0 : i32
    %c0_i32_0 = arith.constant 0 : i32
    return %arg0, %c0_i32 : i32, i32
  }
  func.func @transform_1(%arg0: i32, %arg1: i32) -> (i32, i32) {
    %c0_i32 = arith.constant 0 : i32
    %c0_i32_0 = arith.constant 0 : i32
    return %arg1, %c0_i32 : i32, i32
  }
  func.func @transform_2(%arg0: i32, %arg1: i32) -> (i32, i32) {
    %c0_i32 = arith.constant 0 : i32
    %c0_i32_0 = arith.constant 0 : i32
    return %arg1, %c0_i32 : i32, i32
  }
  func.func @transform_3(%arg0: i32, %arg1: i32) -> (i32, i32) {
    %c0_i32 = arith.constant 0 : i32
    %c0_i32_0 = arith.constant 0 : i32
    %c0_i32_1 = arith.constant 0 : i32
    return %c0_i32, %c0_i32_0 : i32, i32
  }
  func.func @transform_4(%arg0: i32, %arg1: i32) -> (i32, i32) {
    %c0_i32 = arith.constant 0 : i32
    %c0_i32_0 = arith.constant 0 : i32
    return %arg0, %c0_i32 : i32, i32
  }
}

</mosaic_0001>

<bundles_post_ra>
// kernel: tpu_custom_call.1
= control target key start
LH: loop header
LB: loop body
LE: loop exit
PB: predicated region body
PF: predicated region fallthrough
CT: control target
= control target key end

     0   :  { %9 = vsyncpa [#allocation3], 0  ;;  %s672_s0 = inlined_call_operand.hbm [shape: f32[8,128], index: 0, kind: input, shape index: {}]   ;;  %s673_s1 = inlined_call_operand.hbm [shape: f32[128,128], index: 1, kind: input, shape index: {}]   ;;  %s674_s2 = inlined_call_operand.hbm [shape: f32[128,128], index: 2, kind: input, shape index: {}]   ;;  %s675_s3 = inlined_call_operand.hbm [shape: f32[1,128], index: 3, kind: input, shape index: {}]   ;;  %s676_s4 = inlined_call_operand.hbm [shape: f32[8,128], index: 4, kind: output, shape index: {}]  }
   0x1   :  { %10 = vsyncpa [#allocation6], 0 }
   0x2   :  { %11 = vsyncpa [#allocation9], 0 }
   0x3   :  { %12 = vsyncpa [#allocation4], 0  ;;  %s555_s15 = smov [#allocation5]   ;;  %s437_s19 = scalar_lea.hbm %s673_s1, 2048 }
   0x4   :  { %s28_s16 = sshll.u32 %s555_s15, 4  ;;  %p438_p0 = scmp.ne.s32.totalorder %s673_s1, %s437_s19  ;;  %s29_s16 = int_to_ptr.vmem [resolvable:$true] %s28_s16 }
   0x5   :  { %p441_p1 = scmp.lt.u32.totalorder %s437_s19, %s673_s1 }
   0x7   :  { %p443_p2 = pnand %p441_p1, %p438_p0 }
   0x9   :  { %446 = shalt.err (!%p443_p2)
}
   0xa   :  { %s447_s24 = scalar_lea.vmem %s29_s16, 2048  ;;  %p452_p4 = scmp.lt.s32.totalorder %s29_s16, %s29_s16 }
   0xb   :  { %p448_p3 = scmp.ne.s32.totalorder %s29_s16, %s447_s24  ;;  %p453_p5 = scmp.lt.s32.totalorder %s447_s24, %s447_s24 }
   0xd   :  { %p454_p6 = por %p453_p5, %p452_p4 }
   0xf   :  { %p455_p7 = pnand %p454_p6, %p448_p3 }
  0x11   :  { %458 = shalt.err (!%p455_p7)
}
  0x12   :  { %s556_s25 = smov 128   ;;  %s557_s26 = smov 8  }
  0x13   :  { %34 = dma.hbm_to_vmem [thread:$0]  %s673_s1, 2048, %s29_s16, [#allocation6], %s556_s25, %s556_s25, %s557_s26  }
  0x14   :  { %s558_s29 = smov [#allocation2]   ;;  %s559_s5 = smov [#allocation7]  }
  0x15   :  { %s19_s30 = sshll.u32 %s558_s29, 4  ;;  %s40_s6 = sshll.u32 %s559_s5, 4  ;;  %s20_s30 = int_to_ptr.vmem [resolvable:$true] %s19_s30  ;;  %s41_s6 = int_to_ptr.vmem [resolvable:$true] %s40_s6 }
  0x16   :  { %s459_s9 = scalar_lea.hbm %s672_s0, 128 }
  0x17   :  { %p460_p8 = scmp.ne.s32.totalorder %s672_s0, %s459_s9  ;;  %p463_p9 = scmp.lt.u32.totalorder %s459_s9, %s672_s0 }
  0x19   :  { %p465_p10 = pnand %p463_p9, %p460_p8 }
  0x1b   :  { %468 = shalt.err (!%p465_p10)
}
  0x1c   :  { %s469_s1 = scalar_lea.vmem %s20_s30, 128  ;;  %p474_p12 = scmp.lt.s32.totalorder %s20_s30, %s20_s30 }
  0x1d   :  { %p470_p11 = scmp.ne.s32.totalorder %s20_s30, %s469_s1  ;;  %p475_p13 = scmp.lt.s32.totalorder %s469_s1, %s469_s1 }
  0x1f   :  { %p476_p0 = por %p475_p13, %p474_p12 }
  0x21   :  { %p477_p1 = pnand %p476_p0, %p470_p11 }
  0x23   :  { %480 = shalt.err (!%p477_p1)
}
  0x24   :  { %22 = dma.hbm_to_vmem [thread:$0]  %s672_s0, 128, %s20_s30, [#allocation3]  }
  0x25   :  { %s481_s18 = scalar_lea.hbm %s674_s2, 2048 }
  0x26   :  { %p482_p2 = scmp.ne.s32.totalorder %s674_s2, %s481_s18  ;;  %p485_p3 = scmp.lt.u32.totalorder %s481_s18, %s674_s2 }
  0x28   :  { %p487_p4 = pnand %p485_p3, %p482_p2 }
  0x2a   :  { %490 = shalt.err (!%p487_p4)
}
  0x2b   :  { %s491_s23 = scalar_lea.vmem %s41_s6, 2048  ;;  %p496_p6 = scmp.lt.s32.totalorder %s41_s6, %s41_s6 }
  0x2c   :  { %p492_p5 = scmp.ne.s32.totalorder %s41_s6, %s491_s23  ;;  %p497_p7 = scmp.lt.s32.totalorder %s491_s23, %s491_s23 }
  0x2e   :  { %p498_p8 = por %p497_p7, %p496_p6 }
  0x30   :  { %p499_p9 = pnand %p498_p8, %p492_p5 }
  0x32   :  { %502 = shalt.err (!%p499_p9)
}
  0x33   :  { %46 = dma.hbm_to_vmem [thread:$0]  %s674_s2, 2048, %s41_s6, [#allocation6], %s556_s25, %s556_s25, %s557_s26  }
  0x34   :  { %s560_s27 = smov [#allocation8]   ;;  %s503_s5 = scalar_lea.hbm %s675_s3, 16 }
  0x35   :  { %s53_s28 = sshll.u32 %s560_s27, 4  ;;  %p504_p10 = scmp.ne.s32.totalorder %s675_s3, %s503_s5  ;;  %s54_s28 = int_to_ptr.vmem [resolvable:$true] %s53_s28 }
  0x36   :  { %p507_p11 = scmp.lt.u32.totalorder %s503_s5, %s675_s3 }
  0x38   :  { %p509_p12 = pnand %p507_p11, %p504_p10 }
  0x3a   :  { %512 = shalt.err (!%p509_p12)
}
  0x3b   :  { %s513_s11 = scalar_lea.vmem %s54_s28, 16  ;;  %s517_s2 = scalar_lea.vmem %s54_s28, 32 }
  0x3c   :  { %p514_p13 = scmp.ne.s32.totalorder %s54_s28, %s513_s11  ;;  %p518_p0 = scmp.lt.s32.totalorder %s54_s28, %s54_s28 }
  0x3d   :  { %p519_p1 = scmp.lt.s32.totalorder %s517_s2, %s513_s11 }
  0x3f   :  { %p520_p2 = por %p519_p1, %p518_p0 }
  0x41   :  { %p521_p3 = pnand %p520_p2, %p514_p13 }
  0x43   :  { %524 = shalt.err (!%p521_p3)
}
  0x44   :  { %56 = dma.hbm_to_vmem [thread:$0]  %s675_s3, 16, %s54_s28, [#allocation9]  }
  0x45   :  { %547 = dma.done.wait [#allocation3], 128  }
  0x46   :  { %548 = vsyncadd [#allocation3], 4294967168 }
  0x47   :  { %549 = dma.done.wait [#allocation6], 4096  }
  0x48   :  { %550 = vsyncadd [#allocation6], 4294963200 }
  0x49   :  { %551 = dma.done.wait [#allocation9], 16  }
  0x4a   :  { %552 = vsyncadd [#allocation9], 4294967280  ;;  %v561_v0 = vmov 0.0|0.0   ;;  %vm562_vm0 = vmmov 0   ;;  %v563_v1 = vmov 0.0   ;;  %v82_v2 = vld [vmem:[#allocation5] sm:$0xff] }
  0x4b   :  { %379 = vmatprep.subr.bf16.mxu0 %v561_v0  ;;  %341 = vmatprep.mubr.msk.f32.mxu0 %vm562_vm0, %v563_v1  ;;  %v83_v3 = vld [vmem:[#allocation5 + $0x8] sm:$0xff]  ;;  %v84_v5 = vld [vmem:[#allocation5 + $0x10] sm:$0xff]  ;;  %v85_v6 = vld [vmem:[#allocation5 + $0x18] sm:$0xff]  ;;  %s564_s3 = smov [#allocation10]  }
  0x4c   :  { %403 = vmatprep.subr.bf16.mxu1 %v561_v0  ;;  %376 = vmatprep.mubr.msk.f32.mxu1 %vm562_vm0, %v563_v1  ;;  %v380_v4 = vpack.c.bf16 %v83_v3, %v82_v2  ;;  %v98_v7 = vld [vmem:[#allocation7] sm:$0xff]  ;;  %v99_v8 = vld [vmem:[#allocation7 + $0x8] sm:$0xff]  ;;  %v100_v9 = vld [vmem:[#allocation7 + $0x10] sm:$0xff]  ;;  %v383_v11 = vpack.c.bf16 %v85_v6, %v84_v5  ;;  %s263_s6 = sshll.u32 %s564_s3, 4  ;;  %s264_s6 = int_to_ptr.vmem [resolvable:$true] %s263_s6 }
  0x4d   :  { %v101_v10 = vld [vmem:[#allocation7 + $0x18] sm:$0xff]  ;;  %v404_v12 = vpack.c.bf16 %v99_v8, %v98_v7  ;;  %v102_v14 = vld [vmem:[#allocation7 + $0x20] sm:$0xff]  ;;  %v103_v15 = vld [vmem:[#allocation7 + $0x28] sm:$0xff]  ;;  %s525_s12 = scalar_lea.vmem %s264_s6, 128  ;;  %p530_p5 = scmp.lt.s32.totalorder %s264_s6, %s264_s6 }
  0x4e   :  { %381 = vmatpush3.bf16.xpose.msra.mxu0 %v380_v4  ;;  %v407_v13 = vpack.c.bf16 %v101_v10, %v100_v9  ;;  %v86_v16 = vld [vmem:[#allocation5 + $0x20] sm:$0xff]  ;;  %v87_v17 = vld [vmem:[#allocation5 + $0x28] sm:$0xff]  ;;  %v410_v18 = vpack.c.bf16 %v103_v15, %v102_v14  ;;  %v104_v19 = vld [vmem:[#allocation7 + $0x30] sm:$0xff]  ;;  %p526_p4 = scmp.ne.s32.totalorder %s264_s6, %s525_s12  ;;  %p531_p6 = scmp.lt.s32.totalorder %s525_s12, %s525_s12 }
  0x4f   :  { %382 = vmatprep.subr.bf16.mxu0 %v561_v0  ;;  %405 = vmatpush3.bf16.msra.mxu1 %v404_v12  ;;  %v105_v20 = vld [vmem:[#allocation7 + $0x38] sm:$0xff]  ;;  %v386_v21 = vpack.c.bf16 %v87_v17, %v86_v16  ;;  %v106_v23 = vld [vmem:[#allocation7 + $0x40] sm:$0xff]  ;;  %v107_v24 = vld [vmem:[#allocation7 + $0x48] sm:$0xff] }
  0x50   :  { %406 = vmatprep.subr.bf16.mxu1 %v561_v0  ;;  %v413_v22 = vpack.c.bf16 %v105_v20, %v104_v19  ;;  %v88_v25 = vld [vmem:[#allocation5 + $0x30] sm:$0xff]  ;;  %v89_v26 = vld [vmem:[#allocation5 + $0x38] sm:$0xff]  ;;  %v416_v27 = vpack.c.bf16 %v107_v24, %v106_v23  ;;  %v110_v32 = vld [vmem:[#allocation7 + $0x60] sm:$0xff]  ;;  %p532_p7 = por %p531_p6, %p530_p5 }
  0x51   :  { %v108_v28 = vld [vmem:[#allocation7 + $0x50] sm:$0xff]  ;;  %v109_v29 = vld [vmem:[#allocation7 + $0x58] sm:$0xff]  ;;  %v389_v30 = vpack.c.bf16 %v89_v26, %v88_v25  ;;  %v111_v33 = vld [vmem:[#allocation7 + $0x68] sm:$0xff] }
  0x52   :  { %v419_v31 = vpack.c.bf16 %v109_v29, %v108_v28  ;;  %v90_v34 = vld [vmem:[#allocation5 + $0x40] sm:$0xff]  ;;  %v91_v35 = vld [vmem:[#allocation5 + $0x48] sm:$0xff]  ;;  %v422_v36 = vpack.c.bf16 %v111_v33, %v110_v32  ;;  %v112_v37 = vld [vmem:[#allocation7 + $0x70] sm:$0xff]  ;;  %p533_p8 = pnand %p532_p7, %p526_p4 }
  0x53   :  { %408 = vmatpush3.bf16.msra.mxu1 %v407_v13  ;;  %v113_v38 = vld [vmem:[#allocation7 + $0x78] sm:$0xff]  ;;  %v392_v39 = vpack.c.bf16 %v91_v35, %v90_v34  ;;  %v92_v41 = vld [vmem:[#allocation5 + $0x50] sm:$0xff]  ;;  %v94_v44 = vld [vmem:[#allocation5 + $0x60] sm:$0xff] }
  0x54   :  { %409 = vmatprep.subr.bf16.mxu1 %v561_v0  ;;  %v425_v40 = vpack.c.bf16 %v113_v38, %v112_v37  ;;  %v93_v42 = vld [vmem:[#allocation5 + $0x58] sm:$0xff]  ;;  %v95_v45 = vld [vmem:[#allocation5 + $0x68] sm:$0xff]  ;;  %v96_v47 = vld [vmem:[#allocation5 + $0x70] sm:$0xff] }
  0x55   :  { %v395_v43 = vpack.c.bf16 %v93_v42, %v92_v41  ;;  %v398_v46 = vpack.c.bf16 %v95_v45, %v94_v44  ;;  %v97_v48 = vld [vmem:[#allocation5 + $0x78] sm:$0xff]  ;;  %v274_v53 = vld [vmem:[#allocation8] ss:$0 sm:$0xff] }
  0x56   :  { %384 = vmatpush3.bf16.xpose.msra.mxu0 %v383_v11  ;;  %v401_v49 = vpack.c.bf16 %v97_v48, %v96_v47  ;;  %v81_v50 = vld [vmem:[#allocation2] sm:$0xff] }
  0x57   :  { %385 = vmatprep.subr.bf16.mxu0 %v561_v0  ;;  %411 = vmatpush3.bf16.msra.mxu1 %v410_v18 }
  0x58   :  { %412 = vmatprep.subr.bf16.mxu1 %v561_v0 }
  0x5b   :  { %414 = vmatpush3.bf16.msra.mxu1 %v413_v22 }
  0x5c   :  { %415 = vmatprep.subr.bf16.mxu1 %v561_v0 }
  0x5e   :  { %387 = vmatpush3.bf16.xpose.msra.mxu0 %v386_v21 }
  0x5f   :  { %388 = vmatprep.subr.bf16.mxu0 %v561_v0  ;;  %417 = vmatpush3.bf16.msra.mxu1 %v416_v27 }
  0x60   :  { %418 = vmatprep.subr.bf16.mxu1 %v561_v0 }
  0x63   :  { %420 = vmatpush3.bf16.msra.mxu1 %v419_v31 }
  0x64   :  { %421 = vmatprep.subr.bf16.mxu1 %v561_v0 }
  0x66   :  { %390 = vmatpush3.bf16.xpose.msra.mxu0 %v389_v30 }
  0x67   :  { %391 = vmatprep.subr.bf16.mxu0 %v561_v0  ;;  %423 = vmatpush3.bf16.msra.mxu1 %v422_v36 }
  0x68   :  { %424 = vmatprep.subr.bf16.mxu1 %v561_v0 }
  0x6b   :  { %426 = vmatpush3.bf16.msra.mxu1 %v425_v40 }
  0x6e   :  { %393 = vmatpush3.bf16.xpose.msra.mxu0 %v392_v39 }
  0x6f   :  { %394 = vmatprep.subr.bf16.mxu0 %v561_v0 }
  0x76   :  { %396 = vmatpush3.bf16.xpose.msra.mxu0 %v395_v43 }
  0x77   :  { %397 = vmatprep.subr.bf16.mxu0 %v561_v0 }
  0x7e   :  { %399 = vmatpush3.bf16.xpose.msra.mxu0 %v398_v46 }
  0x7f   :  { %400 = vmatprep.subr.bf16.mxu0 %v561_v0 }
  0x86   :  { %402 = vmatpush3.bf16.xpose.msra.mxu0 %v401_v49 }
  0x8d   :  { %342 = vmatmul.mubr.f32.vlgmr.msra.gmra.mrb[0].mxu0 %v81_v50 }
 0x160   :  { %v180_v51 = vpop.f32.mrb[0].mxu0 }
 0x161   :  { %v343_v52 = vpop.f32.mrb[1].mxu0  ;;  %377 = vmatmul.mubr.f32.vlgmr.msra.gmra.mrb[0].mxu1 %v180_v51 }
 0x234   :  { %v250_v54 = vpop.f32.mrb[0].mxu1 }
 0x235   :  { %v255_v55 = vadd.f32 %v274_v53, %v250_v54  ;;  %v378_v56 = vpop.f32.mrb[1].mxu1 }
 0x237   :  { %256 = vst [vmem:[#allocation10] sm:$0xff] %v255_v55 }
 0x238   :  { %536 = shalt.err (!%p533_p8)
}
 0x239   :  { %s537_s14 = scalar_lea.hbm %s676_s4, 128 }
 0x23a   :  { %p538_p9 = scmp.ne.s32.totalorder %s676_s4, %s537_s14  ;;  %p541_p10 = scmp.lt.u32.totalorder %s537_s14, %s676_s4 }
 0x23c   :  { %p543_p11 = pnand %p541_p10, %p538_p9 }
 0x23e   :  { %546 = shalt.err (!%p543_p11)
}
 0x23f   :  { %266 = dma.vmem_to_hbm [thread:$0]  %s264_s6, 128, %s676_s4, [#allocation4]  }
 0x240   :  { %553 = dma.done.wait [#allocation4], 128  }
 0x241   :  { %554 = vsyncadd [#allocation4], 4294967168 }
 0x242   :  { %270 = vsyncpa [#allocation3], 1 }
 0x243   :  { %271 = vsyncpa [#allocation6], 1 }
 0x244   :  { %272 = vsyncpa [#allocation9], 1 }
 0x245   :  { %273 = vsyncpa [#allocation4], 1 }

</bundles_post_ra>
